<compile_context>
chip_gen: v7x
topology: tpu7x:2x2x1
jax: 0.10.0
libtpu: 0.0.40
codegen_flags: <defaults>
</compile_context>

<pallas_src>
import functools

import jax
import jax.numpy as jnp
from jax.experimental import pallas as pl
from jax.experimental.pallas import tpu as pltpu


LN_EPS = 1e-6  # matches nn.LayerNorm(dim, eps=1e-06)


# ----------------------------- kernel ---------------------------------------


def _normalize(x, eps=LN_EPS):
    """LayerNorm with the affine folded into downstream weights: (x - mu) * rsqrt(var)."""
    mu = jnp.mean(x, axis=-1, keepdims=True)
    var = jnp.mean((x - mu) ** 2, axis=-1, keepdims=True)
    return (x - mu) * jax.lax.rsqrt(var + eps)


def _store_broadcast(o_ref, y, *, n, dim):
    """Write y (rows, dim) n times along the lane axis of o_ref (rows, n*dim).

    Uses the smallest repeat factor `rep` such that rep*dim is a multiple of 128 lanes,
    so the bulk of the stores are 128-aligned, unmasked, full-lane vst.  An odd tail
    (e.g. n=9, dim=64) falls back to one masked store.
    """
    rep = 1
    while rep < n and (rep * dim) % 128 != 0:
        rep += 1
    y = y.astype(o_ref.dtype)
    tile = y if rep == 1 else jnp.concatenate([y] * rep, axis=-1)
    n_full = n // rep
    for i in range(n_full):                          # static unroll, aligned stores
        o_ref[:, i * rep * dim:(i + 1) * rep * dim] = tile
    rem = n - n_full * rep
    if rem > 0:                                      # odd-n tail (masked store)
        tail = y if rem == 1 else jnp.concatenate([y] * rem, axis=-1)
        o_ref[:, n_full * rep * dim:] = tail


def transformer_kernel(
    x_ref,        # (Bblk, dim)   flat batch of query vectors
    wattn_ref,    # (dim, dim)    diag(ln1_g) @ Wv @ Wo     (folded)
    battn_ref,    # (1, dim)      ln1_b @ Wv @ Wo + bo      (folded)
    w1_ref,       # (dim, hid)    diag(ln2_g) @ W1          (folded)
    b1_ref,       # (1, hid)      ln2_b @ W1 + b1           (folded)
    w2_ref,       # (hid, dim)
    b2_ref,       # (1, dim)
    o_ref,        # (Bblk, n*dim) lane-dense broadcast output
    *,
    n: int,
    dim: int,
    use_bf16: bool,
):
    mxu = jnp.bfloat16 if use_bf16 else jnp.float32

    x = x_ref[...].astype(jnp.float32)               # (Bblk, dim)

    # ---- attention branch (degenerate: uniform softmax -> attn @ v == v) ----
    attn = jnp.dot(_normalize(x).astype(mxu), wattn_ref[...],
                   preferred_element_type=jnp.float32) + battn_ref[...]
    z = attn + x

    # ---- feed-forward branch -------------------------------------------------
    h1 = jnp.maximum(
        jnp.dot(_normalize(z).astype(mxu), w1_ref[...],
                preferred_element_type=jnp.float32) + b1_ref[...], 0.0)
    y = jnp.dot(h1.astype(mxu), w2_ref[...],
                preferred_element_type=jnp.float32) + b2_ref[...] + z

    # broadcast along n with lane-dense, mostly 128-aligned slice stores
    _store_broadcast(o_ref, y, n=n, dim=dim)


# ----------------------------- wrapper ---------------------------------------


def _round_up(a, m):
    return ((a + m - 1) // m) * m


def transformer_forward(x, params, *, n, heads, dim_head, row_tile=1024,
                        use_bf16=True, out_dtype=None):
    """x: (b1, b2, dim) query vectors; n: source-view count (k.shape[-2]).
    Returns (b1, b2, n, dim), matching the PyTorch Transformer.forward.

    Weights in `params` are stored transposed w.r.t. PyTorch, i.e. (in, out), so the
    math is y = x @ W + b.
    """
    b1, b2, dim = x.shape
    inner = heads * dim_head
    hid = params["w1"].shape[-1]
    B = b1 * b2
    out_dtype = x.dtype if out_dtype is None else jnp.dtype(out_dtype)

    # ---- fold weights in the wrapper (f32) ------------------------------------
    # Only the v projection can influence the output (softmax over identical rows is
    # uniform), so q/k slices of wqkv are dropped and Wv@Wo is precomputed.
    wvo = params["wqkv"][:, 2 * inner: 3 * inner] @ params["wo"]        # (dim, dim)
    w_attn = params["ln1_g"][0][:, None] * wvo                          # (dim, dim)
    b_attn = params["ln1_b"] @ wvo + params["bo"]                       # (1, dim)
    w1f = params["ln2_g"][0][:, None] * params["w1"]                    # (dim, hid)
    b1f = params["ln2_b"] @ params["w1"] + params["b1"]                 # (1, hid)
    w2f = params["w2"]                                                  # (hid, dim)
    b2f = params["b2"]                                                  # (1, dim)
    if use_bf16:
        w_attn, w1f, w2f = (w.astype(jnp.bfloat16) for w in (w_attn, w1f, w2f))

    # ---- tiling: large row tile, clamped to a v7x-safe VMEM budget -------------
    out_isz = jnp.dtype(out_dtype).itemsize
    in_isz = jnp.dtype(x.dtype).itemsize
    w_isz = 2 if use_bf16 else 4

    def vmem_est(bb):
        return (2 * bb * n * dim * out_isz            # output double-buffer (dominant)
                + 2 * bb * dim * in_isz               # input double-buffer
                + 2 * (dim * dim + 2 * dim * hid) * w_isz
                + 2 * (2 * dim + hid) * 4)

    Bblk = min(_round_up(row_tile, 8), _round_up(B, 8))
    while Bblk > 8 and vmem_est(Bblk) > (48 << 20):   # 48 MiB fits v7x's 64 MiB VMEM
        Bblk = max(8, _round_up(Bblk // 2, 8))
    Bpad = _round_up(B, Bblk)
    vmem_limit = min(64 << 20, max(32 << 20, int(vmem_est(Bblk) * 1.5) + (4 << 20)))

    x2d = x.reshape(B, dim)
    if Bpad != B:
        x2d = jnp.pad(x2d, ((0, Bpad - B), (0, 0)))

    full = lambda r, c: pl.BlockSpec((r, c), lambda i: (0, 0))
    kernel = functools.partial(transformer_kernel, n=n, dim=dim, use_bf16=use_bf16)

    out = pl.pallas_call(
        kernel,
        out_shape=jax.ShapeDtypeStruct((Bpad, n * dim), out_dtype),
        grid_spec=pltpu.PrefetchScalarGridSpec(
            num_scalar_prefetch=0,
            grid=(Bpad // Bblk,),
            in_specs=[
                pl.BlockSpec((Bblk, dim), lambda i: (i, 0)),   # x rows
                full(dim, dim),                                # w_attn (folded)
                full(1, dim),                                  # b_attn (folded)
                full(dim, hid),                                # w1'    (folded)
                full(1, hid),                                  # b1'    (folded)
                full(hid, dim),                                # w2
                full(1, dim),                                  # b2
            ],
            out_specs=pl.BlockSpec((Bblk, n * dim), lambda i: (i, 0)),
        ),
        compiler_params=pltpu.CompilerParams(
            # TODO(synk): on v7x verify the batch axis actually shards across both
            # TensorCores; if not, switch to pltpu.CORE_PARALLEL semantics.
            dimension_semantics=("parallel",),
            vmem_limit_bytes=vmem_limit,
        ),
    )(x2d, w_attn, b_attn, w1f, b1f, w2f, b2f)
    return out[:B].reshape(b1, b2, n, dim)


# ----------------------------- reference (plain JAX, full attention) ----------


def transformer_ref(x, params, *, n, heads, dim_head):
    """Mirrors the PyTorch Transformer.forward exactly (full q/k/v attention)."""
    b1, b2, dim = x.shape
    inner = heads * dim_head
    scale = dim_head ** -0.5

    xs = jnp.broadcast_to(x[:, :, None, :], (b1, b2, n, dim))
    residue = xs

    def ln(t, g, b):
        mu = jnp.mean(t, axis=-1, keepdims=True)
        var = jnp.mean((t - mu) ** 2, axis=-1, keepdims=True)
        return (t - mu) * jax.lax.rsqrt(var + LN_EPS) * g[0] + b[0]

    xn = ln(xs, params["ln1_g"], params["ln1_b"])
    qkv = xn @ params["wqkv"]
    q, kk, v = jnp.split(qkv, 3, axis=-1)
    rs = lambda t: t.reshape(b1, b2, n, heads, dim_head).transpose(0, 1, 3, 2, 4)
    q, kk, v = rs(q), rs(kk), rs(v)
    dots = jnp.einsum("bchid,bchjd->bchij", q, kk) * scale
    attn = jax.nn.softmax(dots, axis=-1)
    out = jnp.einsum("bchij,bchjd->bchid", attn, v)
    out = out.transpose(0, 1, 3, 2, 4).reshape(b1, b2, n, inner)
    out = out @ params["wo"] + params["bo"][0]
    xs = out + residue

    residue = xs
    xn = ln(xs, params["ln2_g"], params["ln2_b"])
    h1 = jnp.maximum(xn @ params["w1"] + params["b1"][0], 0.0)
    y = h1 @ params["w2"] + params["b2"][0]
    return y + residue


# ----------------------------- main -------------------------------------------


if __name__ == "__main__":
    # IBRNet uses Transformer(dim=net_width=64, ff_hid_dim=256, heads=2, dim_head=32)
    dim, ff_hid_dim, heads, dim_head = 64, 256, 2, 32
    inner = heads * dim_head
    b1, b2, n = 3, 5, 8          # k: (b1, b2, n, dim) — only n matters

    key = jax.random.PRNGKey(0)
    ks = jax.random.split(key, 10)

    params = {
        "wqkv": jax.random.normal(ks[0], (dim, 3 * inner), jnp.float32) * 0.05,
        "wo":   jax.random.normal(ks[1], (inner, dim), jnp.float32) * 0.05,
        "bo":   jax.random.normal(ks[2], (1, dim), jnp.float32) * 0.01,
        "ln1_g": jnp.ones((1, dim), jnp.float32) * 1.1,
        "ln1_b": jnp.ones((1, dim), jnp.float32) * 0.02,
        "ln2_g": jnp.ones((1, dim), jnp.float32) * 0.9,
        "ln2_b": jnp.ones((1, dim), jnp.float32) * -0.01,
        "w1":   jax.random.normal(ks[3], (dim, ff_hid_dim), jnp.float32) * 0.05,
        "b1":   jax.random.normal(ks[4], (1, ff_hid_dim), jnp.float32) * 0.01,
        "w2":   jax.random.normal(ks[5], (ff_hid_dim, dim), jnp.float32) * 0.05,
        "b2":   jax.random.normal(ks[6], (1, dim), jnp.float32) * 0.01,
    }

    x = jax.random.normal(ks[7], (b1, b2, dim), jnp.float32)

    ref = transformer_ref(x, params, n=n, heads=heads, dim_head=dim_head)

    # f32 path (default large row tile, folded weights)
    out = transformer_forward(x, params, n=n, heads=heads, dim_head=dim_head,
                              use_bf16=False)
    out = jax.block_until_ready(out)
    assert out.shape == (b1, b2, n, dim)
    assert jnp.allclose(out, ref, atol=2e-4, rtol=2e-4), "mismatch vs reference (f32)"

    # f32 path, small row tile -> exercises padding + multi-step parallel grid
    out_small = transformer_forward(x, params, n=n, heads=heads, dim_head=dim_head,
                                    row_tile=8, use_bf16=False)
    out_small = jax.block_until_ready(out_small)
    assert jnp.allclose(out_small, ref, atol=2e-4, rtol=2e-4), "mismatch (tiled)"

    # odd n -> exercises the masked tail store of the broadcast writer
    ref9 = transformer_ref(x, params, n=9, heads=heads, dim_head=dim_head)
    out9 = transformer_forward(x, params, n=9, heads=heads, dim_head=dim_head,
                               use_bf16=False)
    out9 = jax.block_until_ready(out9)
    assert jnp.allclose(out9, ref9, atol=2e-4, rtol=2e-4), "mismatch (odd n)"

    # default bf16 MXU path (f32 accumulation, f32 LN/residuals) — loose tolerance
    out_bf16 = transformer_forward(x, params, n=n, heads=heads, dim_head=dim_head)
    out_bf16 = jax.block_until_ready(out_bf16)
    assert jnp.allclose(out_bf16, ref, atol=1e-1, rtol=1e-1), "mismatch (bf16 MXU)"

    # bf16 output dtype — halves the n-amplified HBM writeback
    out_bf16o = transformer_forward(x, params, n=n, heads=heads, dim_head=dim_head,
                                    out_dtype=jnp.bfloat16)
    out_bf16o = jax.block_until_ready(out_bf16o)
    assert out_bf16o.dtype == jnp.bfloat16
    assert jnp.allclose(out_bf16o.astype(jnp.float32), ref, atol=1e-1, rtol=1e-1), \
        "mismatch (bf16 output)"

    print("KERNEL_OK")
</pallas_src>

<mosaic_0001>
module attributes {stable_mosaic.version = 11 : i64} {
  func.func @transformer_kernel(%arg0: i32, %arg1: memref<16x64xf32, #tpu.memory_space<vmem>>, %arg2: memref<64x64xf32, #tpu.memory_space<vmem>>, %arg3: memref<1x64xf32, #tpu.memory_space<vmem>>, %arg4: memref<64x256xf32, #tpu.memory_space<vmem>>, %arg5: memref<1x256xf32, #tpu.memory_space<vmem>>, %arg6: memref<256x64xf32, #tpu.memory_space<vmem>>, %arg7: memref<1x64xf32, #tpu.memory_space<vmem>>, %arg8: memref<16x512xf32, #tpu.memory_space<vmem>>) attributes {dimension_semantics = [#tpu.dimension_semantics<parallel>], iteration_bounds = array<i64: 1>, scalar_prefetch = 0 : i64, scratch_operands = 0 : i64, tpu.core_type = #tpu.core_type<tc>, window_params = [{transform_indices = @transform_0, window_bounds = array<i64: 16, 64>}, {pipeline_mode = #tpu.pipeline_mode<synchronous>, transform_indices = @transform_1, window_bounds = array<i64: 64, 64>}, {pipeline_mode = #tpu.pipeline_mode<synchronous>, transform_indices = @transform_2, window_bounds = array<i64: 1, 64>}, {pipeline_mode = #tpu.pipeline_mode<synchronous>, transform_indices = @transform_3, window_bounds = array<i64: 64, 256>}, {pipeline_mode = #tpu.pipeline_mode<synchronous>, transform_indices = @transform_4, window_bounds = array<i64: 1, 256>}, {pipeline_mode = #tpu.pipeline_mode<synchronous>, transform_indices = @transform_5, window_bounds = array<i64: 256, 64>}, {pipeline_mode = #tpu.pipeline_mode<synchronous>, transform_indices = @transform_6, window_bounds = array<i64: 1, 64>}, {transform_indices = @transform_7, window_bounds = array<i64: 16, 512>}]} {
    %c0 = arith.constant 0 : index
    %c0_0 = arith.constant 0 : index
    %0 = vector.load %arg1[%c0, %c0_0] : memref<16x64xf32, #tpu.memory_space<vmem>>, vector<16x64xf32>
    %cst = arith.constant dense<0.000000e+00> : vector<16xf32>
    %1 = vector.multi_reduction <add>, %0, %cst [1] : vector<16x64xf32> to vector<16xf32>
    %2 = vector.shape_cast %1 : vector<16xf32> to vector<16x1xf32>
    %cst_1 = arith.constant 6.400000e+01 : f32
    %3 = vector.broadcast %cst_1 : f32 to vector<16x1xf32>
    %4 = arith.divf %2, %3 : vector<16x1xf32>
    %5 = vector.broadcast %4 : vector<16x1xf32> to vector<16x64xf32>
    %6 = arith.subf %0, %5 : vector<16x64xf32>
    %7 = arith.mulf %6, %6 : vector<16x64xf32>
    %cst_2 = arith.constant dense<0.000000e+00> : vector<16xf32>
    %8 = vector.multi_reduction <add>, %7, %cst_2 [1] : vector<16x64xf32> to vector<16xf32>
    %9 = vector.shape_cast %8 : vector<16xf32> to vector<16x1xf32>
    %cst_3 = arith.constant 6.400000e+01 : f32
    %10 = vector.broadcast %cst_3 : f32 to vector<16x1xf32>
    %11 = arith.divf %9, %10 : vector<16x1xf32>
    %12 = vector.broadcast %4 : vector<16x1xf32> to vector<16x64xf32>
    %13 = arith.subf %0, %12 : vector<16x64xf32>
    %cst_4 = arith.constant 9.99999997E-7 : f32
    %14 = vector.broadcast %cst_4 : f32 to vector<16x1xf32>
    %15 = arith.addf %11, %14 : vector<16x1xf32>
    %16 = math.rsqrt %15 : vector<16x1xf32>
    %17 = vector.broadcast %16 : vector<16x1xf32> to vector<16x64xf32>
    %18 = arith.mulf %13, %17 : vector<16x64xf32>
    %c0_5 = arith.constant 0 : index
    %c0_6 = arith.constant 0 : index
    %19 = vector.load %arg2[%c0_5, %c0_6] : memref<64x64xf32, #tpu.memory_space<vmem>>, vector<64x64xf32>
    %cst_7 = arith.constant dense<0.000000e+00> : vector<16x64xf32>
    %20 = tpu.matmul %18, %19, %cst_7 {dimension_numbers = #tpu.dot_dimension_numbers<[1], [0], [0], [1], [0, 0, 1, 1], [], []>} : vector<16x64xf32>, vector<64x64xf32>, vector<16x64xf32> -> vector<16x64xf32>
    %c0_8 = arith.constant 0 : index
    %c0_9 = arith.constant 0 : index
    %21 = vector.load %arg3[%c0_8, %c0_9] : memref<1x64xf32, #tpu.memory_space<vmem>>, vector<1x64xf32>
    %22 = vector.broadcast %21 : vector<1x64xf32> to vector<16x64xf32>
    %23 = arith.addf %20, %22 : vector<16x64xf32>
    %24 = arith.addf %23, %0 : vector<16x64xf32>
    %cst_10 = arith.constant dense<0.000000e+00> : vector<16xf32>
    %25 = vector.multi_reduction <add>, %24, %cst_10 [1] : vector<16x64xf32> to vector<16xf32>
    %26 = vector.shape_cast %25 : vector<16xf32> to vector<16x1xf32>
    %cst_11 = arith.constant 6.400000e+01 : f32
    %27 = vector.broadcast %cst_11 : f32 to vector<16x1xf32>
    %28 = arith.divf %26, %27 : vector<16x1xf32>
    %29 = vector.broadcast %28 : vector<16x1xf32> to vector<16x64xf32>
    %30 = arith.subf %24, %29 : vector<16x64xf32>
    %31 = arith.mulf %30, %30 : vector<16x64xf32>
    %cst_12 = arith.constant dense<0.000000e+00> : vector<16xf32>
    %32 = vector.multi_reduction <add>, %31, %cst_12 [1] : vector<16x64xf32> to vector<16xf32>
    %33 = vector.shape_cast %32 : vector<16xf32> to vector<16x1xf32>
    %cst_13 = arith.constant 6.400000e+01 : f32
    %34 = vector.broadcast %cst_13 : f32 to vector<16x1xf32>
    %35 = arith.divf %33, %34 : vector<16x1xf32>
    %36 = vector.broadcast %28 : vector<16x1xf32> to vector<16x64xf32>
    %37 = arith.subf %24, %36 : vector<16x64xf32>
    %cst_14 = arith.constant 9.99999997E-7 : f32
    %38 = vector.broadcast %cst_14 : f32 to vector<16x1xf32>
    %39 = arith.addf %35, %38 : vector<16x1xf32>
    %40 = math.rsqrt %39 : vector<16x1xf32>
    %41 = vector.broadcast %40 : vector<16x1xf32> to vector<16x64xf32>
    %42 = arith.mulf %37, %41 : vector<16x64xf32>
    %c0_15 = arith.constant 0 : index
    %c0_16 = arith.constant 0 : index
    %43 = vector.load %arg4[%c0_15, %c0_16] : memref<64x256xf32, #tpu.memory_space<vmem>>, vector<64x256xf32>
    %cst_17 = arith.constant dense<0.000000e+00> : vector<16x256xf32>
    %44 = tpu.matmul %42, %43, %cst_17 {dimension_numbers = #tpu.dot_dimension_numbers<[1], [0], [0], [1], [0, 0, 1, 1], [], []>} : vector<16x64xf32>, vector<64x256xf32>, vector<16x256xf32> -> vector<16x256xf32>
    %c0_18 = arith.constant 0 : index
    %c0_19 = arith.constant 0 : index
    %45 = vector.load %arg5[%c0_18, %c0_19] : memref<1x256xf32, #tpu.memory_space<vmem>>, vector<1x256xf32>
    %46 = vector.broadcast %45 : vector<1x256xf32> to vector<16x256xf32>
    %47 = arith.addf %44, %46 : vector<16x256xf32>
    %cst_20 = arith.constant 0.000000e+00 : f32
    %48 = vector.broadcast %cst_20 : f32 to vector<16x256xf32>
    %49 = arith.maximumf %47, %48 : vector<16x256xf32>
    %c0_21 = arith.constant 0 : index
    %c0_22 = arith.constant 0 : index
    %50 = vector.load %arg6[%c0_21, %c0_22] : memref<256x64xf32, #tpu.memory_space<vmem>>, vector<256x64xf32>
    %cst_23 = arith.constant dense<0.000000e+00> : vector<16x64xf32>
    %51 = tpu.matmul %49, %50, %cst_23 {dimension_numbers = #tpu.dot_dimension_numbers<[1], [0], [0], [1], [0, 0, 1, 1], [], []>} : vector<16x256xf32>, vector<256x64xf32>, vector<16x64xf32> -> vector<16x64xf32>
    %c0_24 = arith.constant 0 : index
    %c0_25 = arith.constant 0 : index
    %52 = vector.load %arg7[%c0_24, %c0_25] : memref<1x64xf32, #tpu.memory_space<vmem>>, vector<1x64xf32>
    %53 = vector.broadcast %52 : vector<1x64xf32> to vector<16x64xf32>
    %54 = arith.addf %51, %53 : vector<16x64xf32>
    %55 = arith.addf %54, %24 : vector<16x64xf32>
    %56 = tpu.concatenate %55, %55 in 1 : vector<16x64xf32>, vector<16x64xf32> -> vector<16x128xf32>
    %c0_26 = arith.constant 0 : index
    %c0_27 = arith.constant 0 : index
    %57 = vector.load %arg8[%c0_26, %c0_27] : memref<16x512xf32, #tpu.memory_space<vmem>>, vector<16x128xf32>
    tpu.vector_store %arg8[%c0_26, %c0_27], %56 {strides = array<i32>} : memref<16x512xf32, #tpu.memory_space<vmem>>, vector<16x128xf32>,
    %c0_28 = arith.constant 0 : index
    %c128 = arith.constant 128 : index
    %58 = vector.load %arg8[%c0_28, %c128] : memref<16x512xf32, #tpu.memory_space<vmem>>, vector<16x128xf32>
    tpu.vector_store %arg8[%c0_28, %c128], %56 {strides = array<i32>} : memref<16x512xf32, #tpu.memory_space<vmem>>, vector<16x128xf32>,
    %c0_29 = arith.constant 0 : index
    %c256 = arith.constant 256 : index
    %59 = vector.load %arg8[%c0_29, %c256] : memref<16x512xf32, #tpu.memory_space<vmem>>, vector<16x128xf32>
    tpu.vector_store %arg8[%c0_29, %c256], %56 {strides = array<i32>} : memref<16x512xf32, #tpu.memory_space<vmem>>, vector<16x128xf32>,
    %c0_30 = arith.constant 0 : index
    %c384 = arith.constant 384 : index
    %60 = vector.load %arg8[%c0_30, %c384] : memref<16x512xf32, #tpu.memory_space<vmem>>, vector<16x128xf32>
    tpu.vector_store %arg8[%c0_30, %c384], %56 {strides = array<i32>} : memref<16x512xf32, #tpu.memory_space<vmem>>, vector<16x128xf32>,
    return
  }
  func.func @transform_0(%arg0: i32) -> (i32, i32) {
    %c0_i32 = arith.constant 0 : i32
    %c0_i32_0 = arith.constant 0 : i32
    return %arg0, %c0_i32 : i32, i32
  }
  func.func @transform_1(%arg0: i32) -> (i32, i32) {
    %c0_i32 = arith.constant 0 : i32
    %c0_i32_0 = arith.constant 0 : i32
    %c0_i32_1 = arith.constant 0 : i32
    return %c0_i32, %c0_i32_0 : i32, i32
  }
  func.func @transform_2(%arg0: i32) -> (i32, i32) {
    %c0_i32 = arith.constant 0 : i32
    %c0_i32_0 = arith.constant 0 : i32
    %c0_i32_1 = arith.constant 0 : i32
    return %c0_i32, %c0_i32_0 : i32, i32
  }
  func.func @transform_3(%arg0: i32) -> (i32, i32) {
    %c0_i32 = arith.constant 0 : i32
    %c0_i32_0 = arith.constant 0 : i32
    %c0_i32_1 = arith.constant 0 : i32
    return %c0_i32, %c0_i32_0 : i32, i32
  }
  func.func @transform_4(%arg0: i32) -> (i32, i32) {
    %c0_i32 = arith.constant 0 : i32
    %c0_i32_0 = arith.constant 0 : i32
    %c0_i32_1 = arith.constant 0 : i32
    return %c0_i32, %c0_i32_0 : i32, i32
  }
  func.func @transform_5(%arg0: i32) -> (i32, i32) {
    %c0_i32 = arith.constant 0 : i32
    %c0_i32_0 = arith.constant 0 : i32
    %c0_i32_1 = arith.constant 0 : i32
    return %c0_i32, %c0_i32_0 : i32, i32
  }
  func.func @transform_6(%arg0: i32) -> (i32, i32) {
    %c0_i32 = arith.constant 0 : i32
    %c0_i32_0 = arith.constant 0 : i32
    %c0_i32_1 = arith.constant 0 : i32
    return %c0_i32, %c0_i32_0 : i32, i32
  }
  func.func @transform_7(%arg0: i32) -> (i32, i32) {
    %c0_i32 = arith.constant 0 : i32
    %c0_i32_0 = arith.constant 0 : i32
    return %arg0, %c0_i32 : i32, i32
  }
}

</mosaic_0001>

<bundles_post_ra>
// kernel: tpu_custom_call.1
= control target key start
LH: loop header
LB: loop body
LE: loop exit
PB: predicated region body
PF: predicated region fallthrough
CT: control target
= control target key end

     0   :  { %vm29_vm0 = vcmask 523264   ;;  %s896_s0 = inlined_call_operand.vmem [shape: f32[16,64], index: 0, kind: input, shape index: {}]   ;;  %s897_s1 = inlined_call_operand.vmem [shape: f32[64,64], index: 1, kind: input, shape index: {}]   ;;  %s898_s2 = inlined_call_operand.vmem [shape: f32[1,64], index: 2, kind: input, shape index: {}]   ;;  %s899_s3 = inlined_call_operand.vmem [shape: f32[64,256], index: 3, kind: input, shape index: {}]   ;;  %s900_s4 = inlined_call_operand.vmem [shape: f32[1,256], index: 4, kind: input, shape index: {}]   ;;  %s901_s5 = inlined_call_operand.vmem [shape: f32[256,64], index: 5, kind: input, shape index: {}]   ;;  %s902_s6 = inlined_call_operand.vmem [shape: f32[1,64], index: 6, kind: input, shape index: {}]   ;;  %s903_s7 = inlined_call_operand.hbm [shape: f32[16,512], index: 7, kind: output, shape index: {}]  }
   0x1   :  { %v27_v0 = vld [vmem:[%s896_s0] sm:$0xff]  ;;  %v28_v1 = vld [vmem:[%s896_s0 + $0x8] sm:$0xff] }
   0x2   :  { %12 = vsyncpa [#allocation3], 0  ;;  %v30_v2 = vsel %vm29_vm0, %v27_v0, 0.0  ;;  %v33_v3 = vsel %vm29_vm0, %v28_v1, 0.0  ;;  %v57_v14 = vld [vmem:[%s897_s1] sm:$0xff]  ;;  %v58_v15 = vld [vmem:[%s897_s1 + $0x8] sm:$0xff] }
   0x3   :  { %31 = vadd.xlane.f32.xlu0 %v30_v2  ;;  %v519_v16 = vpack.c.bf16 %v58_v15, %v57_v14  ;;  %v59_v17 = vld [vmem:[%s897_s1 + $0x10] sm:$0xff]  ;;  %v60_v18 = vld [vmem:[%s897_s1 + $0x18] sm:$0xff]  ;;  %v61_v20 = vld [vmem:[%s897_s1 + $0x20] sm:$0xff]  ;;  %s621_s13 = smov 64   ;;  %s622_s14 = smov [#allocation2]  }
   0x4   :  { %v523_v19 = vpack.c.bf16 %v60_v18, %v59_v17  ;;  %v62_v21 = vld [vmem:[%s897_s1 + $0x28] sm:$0xff]  ;;  %v63_v22 = vld [vmem:[%s897_s1 + $0x30] sm:$0xff]  ;;  %v64_v24 = vld [vmem:[%s897_s1 + $0x38] sm:$0xff]  ;;  %s435_s15 = sshll.u32 %s622_s14, 4  ;;  %s436_s15 = int_to_ptr.vmem [resolvable:$true] %s435_s15 }
   0x5   :  { %520 = vmatprep.subr.bf16.mxu1 %v519_v16  ;;  %v527_v23 = vpack.c.bf16 %v62_v21, %v61_v20  ;;  %v531_v25 = vpack.c.bf16 %v64_v24, %v63_v22  ;;  %v446_v36 = vld [vmem:[%s898_s2] ss:$0 sm:$0xff]  ;;  %v182_v55 = vld [vmem:[%s899_s3 + $0x8] sm:$0xff]  ;;  %v184_v56 = vld [vmem:[%s899_s3 + $0x18] sm:$0xff]  ;;  %p601_p1 = scmp.lt.s32.totalorder %s436_s15, %s436_s15 }
   0x6   :  { %522 = vmatpush3.bf16.msra.mxu1 %v519_v16  ;;  %v535_v57 = vpack.c.bf16 %v184_v56, %v182_v55  ;;  %v181_v58 = vld [vmem:[%s899_s3] sm:$0xff]  ;;  %v183_v59 = vld [vmem:[%s899_s3 + $0x10] sm:$0xff]  ;;  %v186_v61 = vld [vmem:[%s899_s3 + $0x28] sm:$0xff] }
   0x7   :  { %34 = vadd.xlane.f32.xlu0 %v33_v3  ;;  %524 = vmatprep.subr.bf16.mxu1 %v523_v19  ;;  %v537_v60 = vpack.c.bf16 %v183_v59, %v181_v58  ;;  %v188_v62 = vld [vmem:[%s899_s3 + $0x38] sm:$0xff]  ;;  %v190_v3 = vld [vmem:[%s899_s3 + $0x48] sm:$0xff]  ;;  %v195_v14 = vld [vmem:[%s899_s3 + $0x70] sm:$0xff] }
   0x8   :  { %v539_v63 = vpack.c.bf16 %v188_v62, %v186_v61  ;;  %v312_v16 = vld [vmem:[%s901_s5 + $0x80] sm:$0xff]  ;;  %v313_v17 = vld [vmem:[%s901_s5 + $0x88] sm:$0xff]  ;;  %v314_v21 = vld [vmem:[%s901_s5 + $0x90] sm:$0xff] }
   0x9   :  { %v296_v18 = vld [vmem:[%s901_s5] sm:$0xff]  ;;  %v297_v20 = vld [vmem:[%s901_s5 + $0x8] sm:$0xff]  ;;  %v315_v22 = vld [vmem:[%s901_s5 + $0x98] sm:$0xff] }
   0xa   :  { %526 = vmatpush3.bf16.msra.mxu1 %v523_v19  ;;  %v551_v19 = vpack.c.bf16 %v313_v17, %v312_v16  ;;  %v555_v24 = vpack.c.bf16 %v315_v22, %v314_v21  ;;  %v324_v55 = vld [vmem:[%s901_s5 + $0xe0] sm:$0xff]  ;;  %v325_v56 = vld [vmem:[%s901_s5 + $0xe8] sm:$0xff] }
   0xb   :  { %528 = vmatprep.subr.bf16.mxu1 %v527_v23  ;;  %v575_v58 = vpack.c.bf16 %v325_v56, %v324_v55 }
   0xc   :  { %552 = vmatprep.subr.bf16.mxu0 %v551_v19 }
   0xe   :  { %530 = vmatpush3.bf16.msra.mxu1 %v527_v23  ;;  %v553_v23 = vpack.c.bf16 %v297_v20, %v296_v18 }
   0xf   :  { %532 = vmatprep.subr.bf16.mxu1 %v531_v25 }
  0x10   :  { %554 = vmatpush3.bf16.msra.mxu0 %v553_v23 }
  0x11   :  { %556 = vmatprep.subr.bf16.mxu0 %v555_v24 }
  0x12   :  { %534 = vmatpush3.bf16.msra.mxu1 %v531_v25  ;;  %v298_v25 = vld [vmem:[%s901_s5 + $0x10] sm:$0xff] }
  0x13   :  { %536 = vmatprep.subr.bf16.mxu1 %v535_v57 }
  0x90   :  { %v32_v4 = vpop.xlane.xlu0 %31 }
  0x91   :  { %v37_v5 = vmul.f32 0.015625, %v32_v4  ;;  %v192_v4 = vld [vmem:[%s899_s3 + $0x58] sm:$0xff] }
  0x93   :  { %v39_v6 = vsub.f32 %v27_v0, %v37_v5  ;;  %v189_v5 = vld [vmem:[%s899_s3 + $0x40] sm:$0xff] }
  0x94   :  { %v35_v7 = vpop.xlane.xlu0 %34 }
  0x95   :  { %v38_v8 = vmul.f32 0.015625, %v35_v7  ;;  %v41_v9 = vmul.f32 %v39_v6, %v39_v6  ;;  %v191_v7 = vld [vmem:[%s899_s3 + $0x50] sm:$0xff] }
  0x97   :  { %v40_v10 = vsub.f32 %v28_v1, %v38_v8  ;;  %v43_v11 = vsel %vm29_vm0, %v41_v9, 0.0  ;;  %v194_v8 = vld [vmem:[%s899_s3 + $0x68] sm:$0xff]  ;;  %v196_v9 = vld [vmem:[%s899_s3 + $0x78] sm:$0xff] }
  0x98   :  { %44 = vadd.xlane.f32.xlu1 %v43_v11  ;;  %v545_v11 = vpack.c.bf16 %v191_v7, %v189_v5  ;;  %v308_v5 = vld [vmem:[%s901_s5 + $0x60] sm:$0xff] }
  0x99   :  { %v42_v12 = vmul.f32 %v40_v10, %v40_v10 }
  0x9b   :  { %v46_v13 = vsel %vm29_vm0, %v42_v12, 0.0  ;;  %v547_v12 = vpack.c.bf16 %v196_v9, %v194_v8  ;;  %v310_v9 = vld [vmem:[%s901_s5 + $0x70] sm:$0xff] }
  0x9c   :  { %47 = vadd.xlane.f32.xlu1 %v46_v13  ;;  %v193_v13 = vld [vmem:[%s899_s3 + $0x60] sm:$0xff] }
  0x9d   :  { %v549_v15 = vpack.c.bf16 %v195_v14, %v193_v13 }
 0x125   :  { %v45_v26 = vpop.xlane.xlu1 %44 }
 0x126   :  { %v49_v27 = vmul.f32 0.015625, %v45_v26  ;;  %v299_v26 = vld [vmem:[%s901_s5 + $0x18] sm:$0xff] }
 0x128   :  { %v51_v28 = vadd.f32 1e-06, %v49_v27  ;;  %v316_v27 = vld [vmem:[%s901_s5 + $0xa0] sm:$0xff] }
 0x129   :  { %v48_v29 = vpop.xlane.xlu1 %47 }
 0x12a   :  { %588 = vrsqrt.f32 %v51_v28  ;;  %v50_v30 = vmul.f32 0.015625, %v48_v29  ;;  %v317_v28 = vld [vmem:[%s901_s5 + $0xa8] sm:$0xff]  ;;  %v557_v29 = vpack.c.bf16 %v299_v26, %v298_v25 }
 0x12c   :  { %v52_v31 = vadd.f32 1e-06, %v50_v30  ;;  %v559_v30 = vpack.c.bf16 %v317_v28, %v316_v27  ;;  %558 = vmatpush3.bf16.msra.mxu0 %v557_v29 }
 0x12e   :  { %590 = vrsqrt.f32 %v52_v31  ;;  %v300_v31 = vld [vmem:[%s901_s5 + $0x20] sm:$0xff]  ;;  %560 = vmatprep.subr.bf16.mxu0 %v559_v30 }
 0x134   :  { %v589_v32 = vpop.eup %588 }
 0x135   :  { %v55_v33 = vmul.f32 %v589_v32, %v39_v6  ;;  %v543_v6 = vpack.c.bf16 %v192_v4, %v190_v3  ;;  %v301_v32 = vld [vmem:[%s901_s5 + $0x28] sm:$0xff] }
 0x137   :  { %516 = vmatprep.mubr.msk.f32.mxu1 %vm29_vm0, %v55_v33  ;;  %v318_v33 = vld [vmem:[%s901_s5 + $0xb0] sm:$0xff] }
 0x138   :  { %v591_v34 = vpop.eup %590 }
 0x139   :  { %v56_v35 = vmul.f32 %v591_v34, %v40_v10  ;;  %v620_v10 = vmov 0.0   ;;  %v319_v34 = vld [vmem:[%s901_s5 + $0xb8] sm:$0xff] }
 0x13b   :  { %517 = vmatmul.mubr.msk.f32.vlgmr.msra.gmra.mrb[0].mxu1 %vm29_vm0, %v56_v35  ;;  %v561_v35 = vpack.c.bf16 %v301_v32, %v300_v31  ;;  %v451_v32 = vld [vmem:[%s902_s6] ss:$0 sm:$0xff]  ;;  %s596_s6 = scalar_lea.vmem %s436_s15, 1024 }
 0x13c   :  { %538 = vmatpush1.bf16.msra.mxu1 %v537_v60  ;;  %279 = vmatprep.mubr.f32.mxu1 %v620_v10  ;;  %p597_p0 = scmp.ne.s32.totalorder %s436_s15, %s596_s6  ;;  %p602_p2 = scmp.lt.s32.totalorder %s596_s6, %s596_s6 }
 0x13d   :  { %540 = vmatprep.subr.bf16.mxu1 %v539_v63  ;;  %562 = vmatpush3.bf16.msra.mxu0 %v561_v35 }
 0x13e   :  { %p603_p3 = por %p602_p2, %p601_p1 }
 0x140   :  { %p604_p4 = pnand %p603_p3, %p597_p0 }
 0x20e   :  { %v518_v37 = vpop.f32.mrb[0].mxu1 }
 0x20f   :  { %v150_v38 = vadd.f32 %v518_v37, %v446_v36  ;;  %v144_v39 = vpop.f32.mrb[1].mxu1  ;;  %v302_v37 = vld [vmem:[%s901_s5 + $0x30] sm:$0xff] }
 0x210   :  { %v145_v40 = vadd.f32 %v446_v36, %v144_v39  ;;  %v563_v36 = vpack.c.bf16 %v319_v34, %v318_v33  ;;  %v320_v39 = vld [vmem:[%s901_s5 + $0xc0] sm:$0xff] }
 0x211   :  { %v704_v41 = vadd.f32 %v150_v38, %v28_v1  ;;  %v187_v1 = vld [vmem:[%s899_s3 + $0x30] sm:$0xff]  ;;  %v303_v38 = vld [vmem:[%s901_s5 + $0x38] sm:$0xff] }
 0x212   :  { %v706_v42 = vadd.f32 %v145_v40, %v27_v0  ;;  %v185_v0 = vld [vmem:[%s899_s3 + $0x20] sm:$0xff]  ;;  %v321_v40 = vld [vmem:[%s901_s5 + $0xc8] sm:$0xff]  ;;  %564 = vmatprep.subr.bf16.mxu0 %v563_v36 }
 0x213   :  { %v158_v43 = vsel %vm29_vm0, %v704_v41, 0.0  ;;  %v541_v2 = vpack.c.bf16 %v187_v1, %v185_v0 }
 0x214   :  { %159 = vadd.xlane.f32.xlu1 %v158_v43  ;;  %v155_v44 = vsel %vm29_vm0, %v706_v42, 0.0  ;;  %v565_v43 = vpack.c.bf16 %v303_v38, %v302_v37 }
 0x215   :  { %156 = vadd.xlane.f32.xlu0 %v155_v44  ;;  %542 = vmatpush1.bf16.msra.mxu1 %v541_v2  ;;  %v567_v44 = vpack.c.bf16 %v321_v40, %v320_v39 }
 0x216   :  { %544 = vmatprep.subr.bf16.mxu1 %v543_v6  ;;  %566 = vmatpush3.bf16.msra.mxu0 %v565_v43  ;;  %v309_v6 = vld [vmem:[%s901_s5 + $0x68] sm:$0xff] }
 0x217   :  { %568 = vmatprep.subr.bf16.mxu0 %v567_v44  ;;  %v577_v7 = vpack.c.bf16 %v309_v6, %v308_v5 }
 0x219   :  { %546 = vmatpush1.bf16.msra.mxu1 %v545_v11 }
 0x21a   :  { %548 = vmatprep.subr.bf16.mxu1 %v547_v12  ;;  %v199_v12 = vlaneseq }
 0x21c   :  { %v200_v13 = vshrl.u32 %v199_v12, 7 }
 0x21d   :  { %550 = vmatpush1.bf16.msra.mxu1 %v549_v15  ;;  %v197_v15 = vld [vmem:[%s900_s4] sm:$0x3] }
 0x21e   :  { %v201_v14 = vsub.s32 0, %v200_v13  ;;  %v205_v16 = vsub.s32 1, %v200_v13 }
 0x220   :  { %v202_v17 = vrot.slane %v197_v15, %v201_v14  ;;  %v206_v18 = vrot.slane %v197_v15, %v205_v16 }
 0x2a1   :  { %v160_v45 = vpop.xlane.xlu1 %159 }
 0x2a2   :  { %v162_v46 = vmul.f32 0.015625, %v160_v45  ;;  %v157_v47 = vpop.xlane.xlu0 %156  ;;  %v304_v45 = vld [vmem:[%s901_s5 + $0x40] sm:$0xff] }
 0x2a3   :  { %v161_v48 = vmul.f32 0.015625, %v157_v47  ;;  %v322_v47 = vld [vmem:[%s901_s5 + $0xd0] sm:$0xff] }
 0x2a4   :  { %v713_v49 = vsub.f32 %v704_v41, %v162_v46  ;;  %v305_v46 = vld [vmem:[%s901_s5 + $0x48] sm:$0xff] }
 0x2a5   :  { %v716_v50 = vsub.f32 %v706_v42, %v161_v48  ;;  %v323_v48 = vld [vmem:[%s901_s5 + $0xd8] sm:$0xff] }
 0x2a6   :  { %v166_v51 = vmul.f32 %v713_v49, %v713_v49 }
 0x2a7   :  { %v165_v52 = vmul.f32 %v716_v50, %v716_v50 }
 0x2a8   :  { %v170_v53 = vsel %vm29_vm0, %v166_v51, 0.0  ;;  %v569_v51 = vpack.c.bf16 %v305_v46, %v304_v45 }
 0x2a9   :  { %171 = vadd.xlane.f32.xlu1 %v170_v53  ;;  %v167_v54 = vsel %vm29_vm0, %v165_v52, 0.0  ;;  %v571_v52 = vpack.c.bf16 %v323_v48, %v322_v47  ;;  %v306_v53 = vld [vmem:[%s901_s5 + $0x50] sm:$0xff] }
 0x2aa   :  { %168 = vadd.xlane.f32.xlu0 %v167_v54  ;;  %v307_v54 = vld [vmem:[%s901_s5 + $0x58] sm:$0xff]  ;;  %570 = vmatpush3.bf16.msra.mxu0 %v569_v51 }
 0x2ab   :  { %v573_v57 = vpack.c.bf16 %v307_v54, %v306_v53  ;;  %572 = vmatprep.subr.bf16.mxu0 %v571_v52 }
 0x2ae   :  { %574 = vmatpush3.bf16.msra.mxu0 %v573_v57 }
 0x2af   :  { %576 = vmatprep.subr.bf16.mxu0 %v575_v58 }
 0x2b2   :  { %578 = vmatpush3.bf16.msra.mxu0 %v577_v7 }
 0x336   :  { %v172_v59 = vpop.xlane.xlu1 %171 }
 0x337   :  { %v174_v60 = vmul.f32 0.015625, %v172_v59  ;;  %v169_v61 = vpop.xlane.xlu0 %168 }
 0x338   :  { %v173_v62 = vmul.f32 0.015625, %v169_v61 }
 0x339   :  { %v176_v63 = vadd.f32 1e-06, %v174_v60 }
 0x33a   :  { %v175_v0 = vadd.f32 1e-06, %v173_v62 }
 0x33c   :  { %592 = vrsqrt.f32 %v175_v0 }
 0x33d   :  { %594 = vrsqrt.f32 %v176_v63 }
 0x346   :  { %v593_v1 = vpop.eup %592 }
 0x347   :  { %v179_v2 = vmul.f32 %v593_v1, %v716_v50  ;;  %v595_v3 = vpop.eup %594  ;;  %v326_v50 = vld [vmem:[%s901_s5 + $0xf0] sm:$0xff] }
 0x348   :  { %v180_v4 = vmul.f32 %v595_v3, %v713_v49  ;;  %v327_v49 = vld [vmem:[%s901_s5 + $0xf8] sm:$0xff] }
 0x349   :  { %449 = vmatmul.mubr.msk.f32.vlgmr.msra.gmra.mrb[2].mxu1 %vm29_vm0, %v179_v2  ;;  %v579_v8 = vpack.c.bf16 %v327_v49, %v326_v50 }
 0x34a   :  { %285 = vmatprep.mubr.f32.mxu1 %v620_v10  ;;  %v311_v10 = vld [vmem:[%s901_s5 + $0x78] sm:$0xff] }
 0x34b   :  { %v581_v11 = vpack.c.bf16 %v311_v10, %v310_v9  ;;  %580 = vmatprep.subr.bf16.mxu0 %v579_v8 }
 0x34d   :  { %450 = vmatmul.mubr.msk.f32.gmra.mrb[4].mxu1 %vm29_vm0, %v180_v4  ;;  %582 = vmatpush3.bf16.msra.mxu0 %v581_v11 }
 0x41c   :  { %v281_v19 = vpop.f32.mrb[2].mxu1 }
 0x41d   :  { %v282_v20 = vadd.f32 %v281_v19, %v202_v17  ;;  %v283_v21 = vpop.f32.mrb[3].mxu1 }
 0x41e   :  { %v284_v22 = vadd.f32 %v283_v21, %v206_v18 }
 0x41f   :  { %v292_v25 = vmax.f32 %v282_v20, 0.0 }
 0x420   :  { %v287_v23 = vpop.f32.mrb[4].mxu1  ;;  %v293_v24 = vmax.f32 %v284_v22, 0.0 }
 0x421   :  { %v288_v26 = vadd.f32 %v287_v23, %v202_v17  ;;  %v289_v27 = vpop.f32.mrb[5].mxu1 }
 0x422   :  { %v290_v28 = vadd.f32 %v289_v27, %v206_v18  ;;  %399 = vmatprep.mubr.f32.mxu0 %v293_v24 }
 0x423   :  { %400 = vmatmul.mubr.f32.vlgmr.msra.gmra.mrb[0].mxu0 %v292_v25  ;;  %v294_v30 = vmax.f32 %v288_v26, 0.0 }
 0x424   :  { %v295_v29 = vmax.f32 %v290_v28, 0.0 }
 0x426   :  { %404 = vmatprep.mubr.f32.mxu0 %v295_v29 }
 0x427   :  { %405 = vmatmul.mubr.f32.gmra.mrb[2].mxu0 %v294_v30 }
 0x4f6   :  { %v494_v31 = vpop.f32.mrb[0].mxu0 }
 0x4f7   :  { %v495_v33 = vpop.f32.mrb[1].mxu0 }
 0x4f8   :  { %v496_v34 = vadd.f32 %v495_v33, %v494_v31 }
 0x4fa   :  { %v402_v35 = vadd.f32 %v496_v34, %v451_v32  ;;  %v497_v36 = vpop.f32.mrb[2].mxu0 }
 0x4fb   :  { %v498_v37 = vpop.f32.mrb[3].mxu0 }
 0x4fc   :  { %v499_v38 = vadd.f32 %v498_v37, %v497_v36  ;;  %v410_v39 = vadd.f32 %v402_v35, %v706_v42 }
 0x4fe   :  { %v407_v40 = vadd.f32 %v499_v38, %v451_v32  ;;  %414 = vrot.lane.b32.xlu0 %v410_v39, %s621_s13 }
 0x500   :  { %v411_v43 = vadd.f32 %v407_v40, %v704_v41 }
 0x502   :  { %416 = vrot.lane.b32.xlu1 %v411_v43, %s621_s13 }
 0x570   :  { %v415_v44 = vpop.permute.xlu0 %414 }
 0x571   :  { %v420_v45 = vsel %vm29_vm0, %v410_v39, %v415_v44 }
 0x572   :  { %422 = vst [vmem:[#allocation2] sm:$0xff] %v420_v45  ;;  %424 = vst [vmem:[#allocation2 + $0x8] sm:$0xff] %v420_v45 }
 0x573   :  { %426 = vst [vmem:[#allocation2 + $0x10] sm:$0xff] %v420_v45  ;;  %428 = vst [vmem:[#allocation2 + $0x18] sm:$0xff] %v420_v45 }
 0x574   :  { %v417_v46 = vpop.permute.xlu1 %416 }
 0x575   :  { %v421_v47 = vsel %vm29_vm0, %v411_v43, %v417_v46 }
 0x576   :  { %423 = vst [vmem:[#allocation2 + $0x20] sm:$0xff] %v421_v47  ;;  %425 = vst [vmem:[#allocation2 + $0x28] sm:$0xff] %v421_v47 }
 0x577   :  { %427 = vst [vmem:[#allocation2 + $0x30] sm:$0xff] %v421_v47  ;;  %429 = vst [vmem:[#allocation2 + $0x38] sm:$0xff] %v421_v47 }
 0x578   :  { %607 = shalt.err (!%p604_p4)
}
 0x579   :  { %s608_s18 = scalar_lea.hbm %s903_s7, 1024 }
 0x57a   :  { %p609_p5 = scmp.ne.s32.totalorder %s903_s7, %s608_s18  ;;  %p612_p6 = scmp.lt.u32.totalorder %s608_s18, %s903_s7 }
 0x57c   :  { %p614_p7 = pnand %p612_p6, %p609_p5 }
 0x57e   :  { %617 = shalt.err (!%p614_p7)
}
 0x57f   :  { %s623_s21 = smov 512   ;;  %s624_s22 = smov 32  }
 0x580   :  { %441 = dma.vmem_to_hbm [thread:$0]  %s436_s15, 1024, %s903_s7, [#allocation3], %s623_s21, %s623_s21, %s624_s22  }
 0x581   :  { %618 = dma.done.wait [#allocation3], 1024  }
 0x582   :  { %619 = vsyncadd [#allocation3], 4294966272 }
 0x583   :  { %445 = vsyncpa [#allocation3], 1 }

</bundles_post_ra>
